<compile_context>
chip_gen: v7x
topology: tpu7x:2x2x1
jax: 0.10.0
libtpu: 0.0.40
codegen_flags: <defaults>
</compile_context>

<pallas_src>
import jax
import jax.numpy as jnp
from jax.experimental import pallas as pl
from jax.experimental.pallas import tpu as pltpu

# ---- model dims (from the PyTorch module) ----
INPUT_FEATURES   = 4
HIDDEN_FEATURES1 = 8
HIDDEN_FEATURES2 = 4
OUTPUT_FEATURES  = 1

# ---- padded tile dims ----
K1_PAD = 8      # layer-1 contraction dim: input features padded only 4 -> 8
PAD_F  = 128    # lane-aligned feature dim for hidden/output layers
MAX_TB = 256    # max batch rows per grid step (feeds the 256-wide MXU on v6e/v7x)


def _mlp_kernel(x_ref, w1_ref, w23_ref, b_ref, o_ref):
    """One batch tile of the fused MLP.

    x_ref   : (TB, 8)        f32   input rows (features zero-padded 4 -> 8)
    w1_ref  : (8, 128)       bf16  layer-1 weight, zero-padded
    w23_ref : (2, 128, 128)  bf16  stacked layer-2 / layer-3 weights, zero-padded
    b_ref   : (3, 128)       f32   stacked biases (b1, b2, b3), zero-padded
    o_ref   : (TB, 128)      f32   output (only column 0 is meaningful)
    """
    b = b_ref[...]                                    # single whole-tile load
    x = x_ref[...].astype(jnp.bfloat16)

    # layer 1: Linear(4 -> 8) + ReLU   (K contracted over 8, not 128)
    h1 = jnp.dot(x, w1_ref[...], preferred_element_type=jnp.float32)
    h1 = jnp.maximum(h1 + b[0:1, :], 0.0).astype(jnp.bfloat16)

    # layer 2: Linear(8 -> 4) + ReLU
    h2 = jnp.dot(h1, w23_ref[0], preferred_element_type=jnp.float32)
    h2 = jnp.maximum(h2 + b[1:2, :], 0.0).astype(jnp.bfloat16)

    # output layer: Linear(4 -> 1), no activation
    out = jnp.dot(h2, w23_ref[1], preferred_element_type=jnp.float32)
    o_ref[...] = (out + b[2:3, :]).astype(o_ref.dtype)


def _pad2d(a, rows, cols, dtype):
    r, c = a.shape
    return jnp.zeros((rows, cols), dtype).at[:r, :c].set(a.astype(dtype))


def pack_params(params):
    """Pad & pack parameters once, outside the per-forward path."""
    w1_p = _pad2d(params["w1"], K1_PAD, PAD_F, jnp.bfloat16)           # (8, 128)
    w2_p = _pad2d(params["w2"], PAD_F, PAD_F, jnp.bfloat16)
    w3_p = _pad2d(params["w3"], PAD_F, PAD_F, jnp.bfloat16)
    w23_p = jnp.stack([w2_p, w3_p], axis=0)                            # (2, 128, 128)
    b_p = jnp.stack([
        _pad2d(params["b1"][None, :], 1, PAD_F, jnp.float32)[0],
        _pad2d(params["b2"][None, :], 1, PAD_F, jnp.float32)[0],
        _pad2d(params["b3"][None, :], 1, PAD_F, jnp.float32)[0],
    ], axis=0)                                                         # (3, 128)
    return {"w1": w1_p, "w23": w23_p, "b": b_p}


def _round_up(n, m):
    return ((n + m - 1) // m) * m


def multilayer_model_forward(x, packed):
    """x: (B, 4) float32.  packed: output of pack_params (already padded)."""
    B, F = x.shape
    assert F <= K1_PAD, F

    tb = min(MAX_TB, _round_up(B, 8))   # batch tile (multiple of 8, capped at 256)
    b_pad = _round_up(B, tb)

    # Only x is padded per call; all params were padded at init time.
    x_p = jnp.zeros((b_pad, K1_PAD), jnp.float32).at[:B, :F].set(x)

    out_padded = pl.pallas_call(
        _mlp_kernel,
        out_shape=jax.ShapeDtypeStruct((b_pad, PAD_F), jnp.float32),
        grid=(b_pad // tb,),
        in_specs=[
            pl.BlockSpec((tb, K1_PAD), lambda i: (i, 0)),           # x: new tile / step
            pl.BlockSpec((K1_PAD, PAD_F), lambda i: (0, 0)),        # w1: VMEM-resident
            pl.BlockSpec((2, PAD_F, PAD_F), lambda i: (0, 0, 0)),   # w2/w3: VMEM-resident
            pl.BlockSpec((3, PAD_F), lambda i: (0, 0)),             # biases: VMEM-resident
        ],
        out_specs=pl.BlockSpec((tb, PAD_F), lambda i: (i, 0)),
        compiler_params=pltpu.CompilerParams(
            dimension_semantics=("parallel",)),  # batch axis -> both TCs on v7x
    )(x_p, packed["w1"], packed["w23"], packed["b"])

    return out_padded[:B, :OUTPUT_FEATURES]


def init_params(key):
    """Deterministic init mimicking PyTorch nn.Linear uniform(-1/sqrt(fan_in), +)."""
    ks = jax.random.split(key, 6)

    def linear(kw, kb, fan_in, fan_out):
        bound = 1.0 / jnp.sqrt(float(fan_in))
        w = jax.random.uniform(kw, (fan_in, fan_out), jnp.float32, -bound, bound)
        b = jax.random.uniform(kb, (fan_out,), jnp.float32, -bound, bound)
        return w, b

    w1, b1 = linear(ks[0], ks[1], INPUT_FEATURES, HIDDEN_FEATURES1)
    w2, b2 = linear(ks[2], ks[3], HIDDEN_FEATURES1, HIDDEN_FEATURES2)
    w3, b3 = linear(ks[4], ks[5], HIDDEN_FEATURES2, OUTPUT_FEATURES)
    return {"w1": w1, "b1": b1, "w2": w2, "b2": b2, "w3": w3, "b3": b3}


def _reference_forward(x, p):
    """Pure-JAX reference mirroring the kernel's bf16-input / f32-accumulate math."""
    q = lambda a: a.astype(jnp.bfloat16).astype(jnp.float32)
    h1 = jnp.maximum(q(x) @ q(p["w1"]) + p["b1"], 0.0)
    h2 = jnp.maximum(q(h1) @ q(p["w2"]) + p["b2"], 0.0)
    return q(h2) @ q(p["w3"]) + p["b3"]


if __name__ == "__main__":
    key = jax.random.PRNGKey(0)
    k_param, k_x = jax.random.split(key)
    params = init_params(k_param)
    packed = pack_params(params)       # padded/packed once, reused per forward

    # module uses x = torch.randn(1, 4); use a small batch of 2 for generality
    x = jax.random.normal(k_x, (2, INPUT_FEATURES), jnp.float32)

    out = multilayer_model_forward(x, packed)
    out = jax.block_until_ready(out)

    ref = _reference_forward(x, params)
    assert out.shape == (2, OUTPUT_FEATURES), out.shape
    assert jnp.allclose(out, ref, atol=1e-4, rtol=1e-4), (out, ref)

    print("KERNEL_OK")
</pallas_src>

<mosaic_0001>
module attributes {stable_mosaic.version = 11 : i64} {
  func.func @_mlp_kernel(%arg0: i32, %arg1: memref<8x8xf32, #tpu.memory_space<vmem>>, %arg2: memref<8x128xbf16, #tpu.memory_space<vmem>>, %arg3: memref<2x128x128xbf16, #tpu.memory_space<vmem>>, %arg4: memref<3x128xf32, #tpu.memory_space<vmem>>, %arg5: memref<8x128xf32, #tpu.memory_space<vmem>>) attributes {dimension_semantics = [#tpu.dimension_semantics<parallel>], iteration_bounds = array<i64: 1>, scalar_prefetch = 0 : i64, scratch_operands = 0 : i64, tpu.core_type = #tpu.core_type<tc>, window_params = [{transform_indices = @transform_0, window_bounds = array<i64: 8, 8>}, {pipeline_mode = #tpu.pipeline_mode<synchronous>, transform_indices = @transform_1, window_bounds = array<i64: 8, 128>}, {pipeline_mode = #tpu.pipeline_mode<synchronous>, transform_indices = @transform_2, window_bounds = array<i64: 2, 128, 128>}, {pipeline_mode = #tpu.pipeline_mode<synchronous>, transform_indices = @transform_3, window_bounds = array<i64: 3, 128>}, {transform_indices = @transform_4, window_bounds = array<i64: 8, 128>}]} {
    %c0 = arith.constant 0 : index
    %c0_0 = arith.constant 0 : index
    %0 = vector.load %arg4[%c0, %c0_0] : memref<3x128xf32, #tpu.memory_space<vmem>>, vector<3x128xf32>
    %c0_1 = arith.constant 0 : index
    %c0_2 = arith.constant 0 : index
    %1 = vector.load %arg1[%c0_1, %c0_2] : memref<8x8xf32, #tpu.memory_space<vmem>>, vector<8x8xf32>
    %2 = arith.truncf %1 : vector<8x8xf32> to vector<8x8xbf16>
    %c0_3 = arith.constant 0 : index
    %c0_4 = arith.constant 0 : index
    %3 = vector.load %arg2[%c0_3, %c0_4] : memref<8x128xbf16, #tpu.memory_space<vmem>>, vector<8x128xbf16>
    %cst = arith.constant dense<0.000000e+00> : vector<8x128xf32>
    %4 = tpu.matmul %2, %3, %cst {dimension_numbers = #tpu.dot_dimension_numbers<[1], [0], [0], [1], [0, 0, 1, 1], [], []>} : vector<8x8xbf16>, vector<8x128xbf16>, vector<8x128xf32> -> vector<8x128xf32>
    %5 = vector.extract_strided_slice %0 {offsets = [0, 0], sizes = [1, 128], strides = [1, 1]} : vector<3x128xf32> to vector<1x128xf32>
    %6 = vector.broadcast %5 : vector<1x128xf32> to vector<8x128xf32>
    %7 = arith.addf %4, %6 : vector<8x128xf32>
    %cst_5 = arith.constant 0.000000e+00 : f32
    %8 = vector.broadcast %cst_5 : f32 to vector<8x128xf32>
    %9 = arith.maximumf %7, %8 : vector<8x128xf32>
    %10 = arith.truncf %9 : vector<8x128xf32> to vector<8x128xbf16>
    %c0_6 = arith.constant 0 : index
    %c0_7 = arith.constant 0 : index
    %c0_8 = arith.constant 0 : index
    %11 = vector.load %arg3[%c0_6, %c0_7, %c0_8] : memref<2x128x128xbf16, #tpu.memory_space<vmem>>, vector<1x128x128xbf16>
    %12 = vector.shape_cast %11 : vector<1x128x128xbf16> to vector<128x128xbf16>
    %cst_9 = arith.constant dense<0.000000e+00> : vector<8x128xf32>
    %13 = tpu.matmul %10, %12, %cst_9 {dimension_numbers = #tpu.dot_dimension_numbers<[1], [0], [0], [1], [0, 0, 1, 1], [], []>} : vector<8x128xbf16>, vector<128x128xbf16>, vector<8x128xf32> -> vector<8x128xf32>
    %14 = vector.extract_strided_slice %0 {offsets = [1, 0], sizes = [1, 128], strides = [1, 1]} : vector<3x128xf32> to vector<1x128xf32>
    %15 = vector.broadcast %14 : vector<1x128xf32> to vector<8x128xf32>
    %16 = arith.addf %13, %15 : vector<8x128xf32>
    %cst_10 = arith.constant 0.000000e+00 : f32
    %17 = vector.broadcast %cst_10 : f32 to vector<8x128xf32>
    %18 = arith.maximumf %16, %17 : vector<8x128xf32>
    %19 = arith.truncf %18 : vector<8x128xf32> to vector<8x128xbf16>
    %c1 = arith.constant 1 : index
    %c0_11 = arith.constant 0 : index
    %c0_12 = arith.constant 0 : index
    %20 = vector.load %arg3[%c1, %c0_11, %c0_12] : memref<2x128x128xbf16, #tpu.memory_space<vmem>>, vector<1x128x128xbf16>
    %21 = vector.shape_cast %20 : vector<1x128x128xbf16> to vector<128x128xbf16>
    %cst_13 = arith.constant dense<0.000000e+00> : vector<8x128xf32>
    %22 = tpu.matmul %19, %21, %cst_13 {dimension_numbers = #tpu.dot_dimension_numbers<[1], [0], [0], [1], [0, 0, 1, 1], [], []>} : vector<8x128xbf16>, vector<128x128xbf16>, vector<8x128xf32> -> vector<8x128xf32>
    %23 = vector.extract_strided_slice %0 {offsets = [2, 0], sizes = [1, 128], strides = [1, 1]} : vector<3x128xf32> to vector<1x128xf32>
    %24 = vector.broadcast %23 : vector<1x128xf32> to vector<8x128xf32>
    %25 = arith.addf %22, %24 : vector<8x128xf32>
    %c0_14 = arith.constant 0 : index
    %c0_15 = arith.constant 0 : index
    %26 = vector.load %arg5[%c0_14, %c0_15] : memref<8x128xf32, #tpu.memory_space<vmem>>, vector<8x128xf32>
    tpu.vector_store %arg5[%c0_14, %c0_15], %25 {strides = array<i32>} : memref<8x128xf32, #tpu.memory_space<vmem>>, vector<8x128xf32>,
    return
  }
  func.func @transform_0(%arg0: i32) -> (i32, i32) {
    %c0_i32 = arith.constant 0 : i32
    %c0_i32_0 = arith.constant 0 : i32
    return %arg0, %c0_i32 : i32, i32
  }
  func.func @transform_1(%arg0: i32) -> (i32, i32) {
    %c0_i32 = arith.constant 0 : i32
    %c0_i32_0 = arith.constant 0 : i32
    %c0_i32_1 = arith.constant 0 : i32
    return %c0_i32, %c0_i32_0 : i32, i32
  }
  func.func @transform_2(%arg0: i32) -> (i32, i32, i32) {
    %c0_i32 = arith.constant 0 : i32
    %c0_i32_0 = arith.constant 0 : i32
    %c0_i32_1 = arith.constant 0 : i32
    %c0_i32_2 = arith.constant 0 : i32
    return %c0_i32, %c0_i32_0, %c0_i32_1 : i32, i32, i32
  }
  func.func @transform_3(%arg0: i32) -> (i32, i32) {
    %c0_i32 = arith.constant 0 : i32
    %c0_i32_0 = arith.constant 0 : i32
    %c0_i32_1 = arith.constant 0 : i32
    return %c0_i32, %c0_i32_0 : i32, i32
  }
  func.func @transform_4(%arg0: i32) -> (i32, i32) {
    %c0_i32 = arith.constant 0 : i32
    %c0_i32_0 = arith.constant 0 : i32
    return %arg0, %c0_i32 : i32, i32
  }
}

</mosaic_0001>

<bundles_post_ra>
// kernel: tpu_custom_call.1
= control target key start
LH: loop header
LB: loop body
LE: loop exit
PB: predicated region body
PF: predicated region fallthrough
CT: control target
= control target key end

     0   :  { %9 = vsyncpa [#allocation3], 0  ;;  %s658_s0 = inlined_call_operand.hbm [shape: f32[8,8], index: 0, kind: input, shape index: {}]   ;;  %s659_s1 = inlined_call_operand.hbm [shape: bf16[8,128], index: 1, kind: input, shape index: {}]   ;;  %s660_s2 = inlined_call_operand.hbm [shape: bf16[2,128,128], index: 2, kind: input, shape index: {}]   ;;  %s661_s3 = inlined_call_operand.vmem [shape: f32[3,128], index: 3, kind: input, shape index: {}]   ;;  %s662_s4 = inlined_call_operand.hbm [shape: f32[8,128], index: 4, kind: output, shape index: {}]  }
   0x1   :  { %10 = vsyncpa [#allocation6], 0 }
   0x2   :  { %11 = vsyncpa [#allocation4], 0  ;;  %s551_s15 = smov [#allocation5]   ;;  %s552_s17 = smov [#allocation2]  }
   0x3   :  { %s28_s16 = sshll.u32 %s551_s15, 4  ;;  %s18_s18 = sshll.u32 %s552_s17, 4  ;;  %s29_s16 = int_to_ptr.vmem [resolvable:$true] %s28_s16  ;;  %s19_s18 = int_to_ptr.vmem [resolvable:$true] %s18_s18 }
   0x4   :  { %s457_s21 = scalar_lea.hbm %s659_s1, 64 }
   0x5   :  { %p458_p0 = scmp.ne.s32.totalorder %s659_s1, %s457_s21  ;;  %p461_p1 = scmp.lt.u32.totalorder %s457_s21, %s659_s1 }
   0x7   :  { %p463_p2 = pnand %p461_p1, %p458_p0 }
   0x9   :  { %466 = shalt.err (!%p463_p2)
}
   0xa   :  { %s467_s26 = scalar_lea.vmem %s29_s16, 64  ;;  %p472_p4 = scmp.lt.s32.totalorder %s29_s16, %s29_s16 }
   0xb   :  { %p468_p3 = scmp.ne.s32.totalorder %s29_s16, %s467_s26  ;;  %p473_p5 = scmp.lt.s32.totalorder %s467_s26, %s467_s26 }
   0xd   :  { %p474_p6 = por %p473_p5, %p472_p4 }
   0xf   :  { %p475_p7 = pnand %p474_p6, %p468_p3 }
  0x11   :  { %478 = shalt.err (!%p475_p7)
}
  0x12   :  { %31 = dma.hbm_to_vmem [thread:$0]  %s659_s1, 64, %s29_s16, [#allocation6]  }
  0x13   :  { %s479_s5 = scalar_lea.hbm %s658_s0, 128 }
  0x14   :  { %p480_p8 = scmp.ne.s32.totalorder %s658_s0, %s479_s5  ;;  %p483_p9 = scmp.lt.u32.totalorder %s479_s5, %s658_s0 }
  0x16   :  { %p485_p10 = pnand %p483_p9, %p480_p8 }
  0x18   :  { %488 = shalt.err (!%p485_p10)
}
  0x19   :  { %s489_s10 = scalar_lea.vmem %s19_s18, 128  ;;  %p494_p12 = scmp.lt.s32.totalorder %s19_s18, %s19_s18 }
  0x1a   :  { %p490_p11 = scmp.ne.s32.totalorder %s19_s18, %s489_s10  ;;  %p495_p13 = scmp.lt.s32.totalorder %s489_s10, %s489_s10 }
  0x1c   :  { %p496_p0 = por %p495_p13, %p494_p12 }
  0x1e   :  { %p497_p1 = pnand %p496_p0, %p490_p11 }
  0x20   :  { %500 = shalt.err (!%p497_p1)
}
  0x21   :  { %21 = dma.hbm_to_vmem [thread:$0]  %s658_s0, 128, %s19_s18, [#allocation3]  }
  0x22   :  { %s553_s12 = smov [#allocation7]   ;;  %s501_s16 = scalar_lea.hbm %s660_s2, 2048 }
  0x23   :  { %s37_s13 = sshll.u32 %s553_s12, 4  ;;  %p502_p2 = scmp.ne.s32.totalorder %s660_s2, %s501_s16  ;;  %s38_s13 = int_to_ptr.vmem [resolvable:$true] %s37_s13 }
  0x24   :  { %p505_p3 = scmp.lt.u32.totalorder %s501_s16, %s660_s2 }
  0x26   :  { %p507_p4 = pnand %p505_p3, %p502_p2 }
  0x28   :  { %510 = shalt.err (!%p507_p4)
}
  0x29   :  { %s511_s22 = scalar_lea.vmem %s38_s13, 2048  ;;  %p516_p6 = scmp.lt.s32.totalorder %s38_s13, %s38_s13 }
  0x2a   :  { %p512_p5 = scmp.ne.s32.totalorder %s38_s13, %s511_s22  ;;  %p517_p7 = scmp.lt.s32.totalorder %s511_s22, %s511_s22 }
  0x2c   :  { %p518_p8 = por %p517_p7, %p516_p6 }
  0x2e   :  { %p519_p9 = pnand %p518_p8, %p512_p5 }
  0x30   :  { %522 = shalt.err (!%p519_p9)
}
  0x31   :  { %s554_s0 = smov 64   ;;  %s555_s18 = smov 4  }
  0x32   :  { %43 = dma.hbm_to_vmem [thread:$0]  %s660_s2, 2048, %s38_s13, [#allocation6], %s554_s0, %s554_s0, %s555_s18  }
  0x33   :  { %545 = dma.done.wait [#allocation3], 128  }
  0x34   :  { %546 = vsyncadd [#allocation3], 4294967168 }
  0x35   :  { %547 = dma.done.wait [#allocation6], 2112  }
  0x36   :  { %548 = vsyncadd [#allocation6], 4294965184  ;;  %v556_v0 = vmov 0.0   ;;  %vm557_vm0 = vmmov 0   ;;  %vm68_vm1 = vcmask 1043456   ;;  %v57_v2 = vld [vmem:[#allocation2] sm:$0xff]  ;;  %v60_v19 = vlaneseq }
  0x37   :  { %387 = vmatprep.subr.bf16.mxu0 %v556_v0  ;;  %389 = vmatprep.mubr.msk.bf16.mxu0 %vm557_vm0, %v556_v0  ;;  %v59_v1 = vld [vmem:[#allocation5] sm:$0xf]  ;;  %v58_v4 = vpack.c.bf16 %v57_v2, %v57_v2  ;;  %v441_v5 = vld [vmem:[#allocation7] sm:$0xff]   ;;  %vm64_vm2 = vcmask 64512   ;;  %v442_v6 = vld [vmem:[#allocation7 + $0x8] sm:$0xff]  }
  0x38   :  { %393 = vmatprep.subr.bf16.mxu1 %v556_v0  ;;  %409 = vmatprep.mubr.msk.bf16.mxu1 %vm557_vm0, %v556_v0  ;;  %v70_v3 = vsel %vm68_vm1, %v59_v1, 0  ;;  %v443_v7 = vld [vmem:[#allocation7 + $0x10] sm:$0xff]   ;;  %v444_v8 = vld [vmem:[#allocation7 + $0x18] sm:$0xff]   ;;  %v445_v9 = vld [vmem:[#allocation7 + $0x20] sm:$0xff]   ;;  %v61_v20 = vshrl.u32 %v60_v19, 7 }
  0x39   :  { %388 = vmatpush3.bf16.msra.mxu0 %v70_v3  ;;  %394 = vmatpush3.bf16.msra.mxu1 %v441_v5  ;;  %v446_v10 = vld [vmem:[#allocation7 + $0x28] sm:$0xff]   ;;  %v447_v11 = vld [vmem:[#allocation7 + $0x30] sm:$0xff]   ;;  %v448_v12 = vld [vmem:[#allocation7 + $0x38] sm:$0xff]  }
  0x3a   :  { %413 = vmatprep.subr.bf16.mxu0 %v556_v0  ;;  %395 = vmatprep.subr.bf16.mxu1 %v556_v0  ;;  %v449_v13 = vld [vmem:[#allocation7 + $0x40] sm:$0xff]   ;;  %v450_v14 = vld [vmem:[#allocation7 + $0x48] sm:$0xff]   ;;  %v451_v15 = vld [vmem:[#allocation7 + $0x50] sm:$0xff]   ;;  %v62_v21 = vsub.s32 0, %v61_v20  ;;  %v132_v33 = vsub.s32 1, %v61_v20  ;;  %v243_v42 = vsub.s32 2, %v61_v20 }
  0x3b   :  { %v452_v16 = vld [vmem:[#allocation7 + $0x58] sm:$0xff]   ;;  %v453_v17 = vld [vmem:[#allocation7 + $0x60] sm:$0xff]   ;;  %v454_v18 = vld [vmem:[#allocation7 + $0x68] sm:$0xff]  }
  0x3c   :  { %390 = vmatmul.mubr.msk.bf16.vlgmr.msra.gmra.mrb[0].mxu0 %vm64_vm2, %v58_v4  ;;  %v56_v22 = vld [vmem:[%s661_s3] sm:$0x7]  ;;  %v456_v32 = vld [vmem:[#allocation7 + $0x78] sm:$0xff]   ;;  %s558_s3 = smov [#allocation8]  }
  0x3d   :  { %429 = vmatprep.mubr.msk.bf16.mxu0 %vm557_vm0, %v556_v0  ;;  %396 = vmatpush3.bf16.msra.mxu1 %v442_v6  ;;  %v63_v23 = vrot.slane %v56_v22, %v62_v21  ;;  %v455_v31 = vld [vmem:[#allocation7 + $0x70] sm:$0xff]   ;;  %v133_v34 = vrot.slane %v56_v22, %v132_v33  ;;  %v244_v43 = vrot.slane %v56_v22, %v243_v42  ;;  %s340_s26 = sshll.u32 %s558_s3, 4  ;;  %s341_s26 = int_to_ptr.vmem [resolvable:$true] %s340_s26 }
  0x3e   :  { %397 = vmatprep.subr.bf16.mxu1 %v556_v0  ;;  %414 = vmatpush3.bf16.msra.mxu0 %v449_v13  ;;  %s523_s27 = scalar_lea.vmem %s341_s26, 128  ;;  %p528_p11 = scmp.lt.s32.totalorder %s341_s26, %s341_s26 }
  0x3f   :  { %415 = vmatprep.subr.bf16.mxu0 %v556_v0  ;;  %p524_p10 = scmp.ne.s32.totalorder %s341_s26, %s523_s27  ;;  %p529_p12 = scmp.lt.s32.totalorder %s523_s27, %s523_s27 }
  0x41   :  { %398 = vmatpush3.bf16.msra.mxu1 %v443_v7  ;;  %p530_p13 = por %p529_p12, %p528_p11 }
  0x42   :  { %399 = vmatprep.subr.bf16.mxu1 %v556_v0  ;;  %416 = vmatpush3.bf16.msra.mxu0 %v450_v14 }
  0x43   :  { %417 = vmatprep.subr.bf16.mxu0 %v556_v0  ;;  %p531_p0 = pnand %p530_p13, %p524_p10 }
  0x45   :  { %400 = vmatpush3.bf16.msra.mxu1 %v444_v8 }
  0x46   :  { %401 = vmatprep.subr.bf16.mxu1 %v556_v0  ;;  %418 = vmatpush3.bf16.msra.mxu0 %v451_v15 }
  0x47   :  { %419 = vmatprep.subr.bf16.mxu0 %v556_v0 }
  0x49   :  { %402 = vmatpush3.bf16.msra.mxu1 %v445_v9 }
  0x4a   :  { %403 = vmatprep.subr.bf16.mxu1 %v556_v0  ;;  %420 = vmatpush3.bf16.msra.mxu0 %v452_v16 }
  0x4b   :  { %421 = vmatprep.subr.bf16.mxu0 %v556_v0 }
  0x4d   :  { %404 = vmatpush3.bf16.msra.mxu1 %v446_v10 }
  0x4e   :  { %405 = vmatprep.subr.bf16.mxu1 %v556_v0  ;;  %422 = vmatpush3.bf16.msra.mxu0 %v453_v17 }
  0x4f   :  { %423 = vmatprep.subr.bf16.mxu0 %v556_v0 }
  0x51   :  { %406 = vmatpush3.bf16.msra.mxu1 %v447_v11 }
  0x52   :  { %407 = vmatprep.subr.bf16.mxu1 %v556_v0  ;;  %424 = vmatpush3.bf16.msra.mxu0 %v454_v18 }
  0x53   :  { %425 = vmatprep.subr.bf16.mxu0 %v556_v0 }
  0x55   :  { %408 = vmatpush3.bf16.msra.mxu1 %v448_v12 }
  0x56   :  { %426 = vmatpush3.bf16.msra.mxu0 %v455_v31 }
  0x57   :  { %427 = vmatprep.subr.bf16.mxu0 %v556_v0 }
  0x5a   :  { %428 = vmatpush3.bf16.msra.mxu0 %v456_v32 }
 0x10f   :  { %v106_v24 = vpop.f32.mrb[0].mxu0 }
 0x110   :  { %v107_v25 = vadd.f32 %v106_v24, %v63_v23  ;;  %v391_v26 = vpop.f32.mrb[1].mxu0 }
 0x111   :  { %v109_v27 = vpop.f32.mrb[2].mxu0 }
 0x112   :  { %v112_v28 = vmax.f32 %v107_v25, 0.0  ;;  %v392_v29 = vpop.f32.mrb[3].mxu0 }
 0x114   :  { %v113_v30 = vpack.c.bf16 %v112_v28, %v112_v28 }
 0x116   :  { %410 = vmatmul.mubr.bf16.vlgmr.msra.gmra.mrb[0].mxu1 %v113_v30 }
 0x1e9   :  { %v216_v35 = vpop.f32.mrb[0].mxu1 }
 0x1ea   :  { %v217_v36 = vadd.f32 %v216_v35, %v133_v34  ;;  %v411_v37 = vpop.f32.mrb[1].mxu1 }
 0x1eb   :  { %v219_v38 = vpop.f32.mrb[2].mxu1 }
 0x1ec   :  { %v222_v39 = vmax.f32 %v217_v36, 0.0  ;;  %v412_v40 = vpop.f32.mrb[3].mxu1 }
 0x1ee   :  { %v223_v41 = vpack.c.bf16 %v222_v39, %v222_v39 }
 0x1f0   :  { %430 = vmatmul.mubr.bf16.vlgmr.msra.gmra.mrb[4].mxu0 %v223_v41 }
 0x2c3   :  { %v327_v44 = vpop.f32.mrb[4].mxu0 }
 0x2c4   :  { %v328_v45 = vadd.f32 %v327_v44, %v244_v43  ;;  %v431_v46 = vpop.f32.mrb[5].mxu0 }
 0x2c5   :  { %v330_v47 = vpop.f32.mrb[6].mxu0 }
 0x2c6   :  { %333 = vst [vmem:[#allocation8] sm:$0xff] %v328_v45  ;;  %v432_v48 = vpop.f32.mrb[7].mxu0 }
 0x2c7   :  { %534 = shalt.err (!%p531_p0)
}
 0x2c8   :  { %s535_s30 = scalar_lea.hbm %s662_s4, 128 }
 0x2c9   :  { %p536_p1 = scmp.ne.s32.totalorder %s662_s4, %s535_s30  ;;  %p539_p2 = scmp.lt.u32.totalorder %s535_s30, %s662_s4 }
 0x2cb   :  { %p541_p3 = pnand %p539_p2, %p536_p1 }
 0x2cd   :  { %544 = shalt.err (!%p541_p3)
}
 0x2ce   :  { %343 = dma.vmem_to_hbm [thread:$0]  %s341_s26, 128, %s662_s4, [#allocation4]  }
 0x2cf   :  { %549 = dma.done.wait [#allocation4], 128  }
 0x2d0   :  { %550 = vsyncadd [#allocation4], 4294967168 }
 0x2d1   :  { %347 = vsyncpa [#allocation3], 1 }
 0x2d2   :  { %348 = vsyncpa [#allocation6], 1 }
 0x2d3   :  { %349 = vsyncpa [#allocation4], 1 }

</bundles_post_ra>
